<compile_context>
chip_gen: v5e
topology: v5e:2x2
jax: 0.10.0
libtpu: 0.0.40
codegen_flags: <defaults>
</compile_context>

<pallas_src>
import functools

import jax
import jax.numpy as jnp
from jax.experimental import pallas as pl
from jax.experimental.pallas import tpu as pltpu


def _round_up(x, m):
    return ((x + m - 1) // m) * m


def _pick_batch_tile(batch, tb_max=512):
    """Row tile: multiple of 8, capped at tb_max, >=2 grid steps if possible."""
    if batch <= 8:
        return 8
    return max(8, min(tb_max, _round_up((batch + 1) // 2, 8)))


def _mlp_tanh_kernel(z_ref, w_in_ref, b_in_ref, w1_ref, b1_ref,
                     w2_ref, b2_ref, w_out_ref, b_out_ref, o_ref):
    # linear_in + relu (bf16 operands, f32 accumulation on the MXU)
    h = jnp.dot(z_ref[...], w_in_ref[...],
                preferred_element_type=jnp.float32) + b_in_ref[...]
    h = jnp.maximum(h, 0.0)

    # linear_test + relu
    h = jnp.dot(h.astype(w1_ref.dtype), w1_ref[...],
                preferred_element_type=jnp.float32) + b1_ref[...]
    h = jnp.maximum(h, 0.0)

    # linear_test2 + relu
    h = jnp.dot(h.astype(w2_ref.dtype), w2_ref[...],
                preferred_element_type=jnp.float32) + b2_ref[...]
    h = jnp.maximum(h, 0.0)

    # linear_out + tanh (the view to (..., IC, IC) happens in the wrapper)
    out = jnp.dot(h.astype(w_out_ref.dtype), w_out_ref[...],
                  preferred_element_type=jnp.float32) + b_out_ref[...]
    o_ref[...] = jnp.tanh(out)


@functools.partial(jax.jit, static_argnames=("input_channels",))
def final_tanh_ff_forward(z, params, *, input_channels):
    """z: (..., input_channels) -> (..., input_channels, input_channels)."""
    w_in, b_in, w1, b1, w2, b2, w_out, b_out = params

    lead_shape = z.shape[:-1]
    ic = z.shape[-1]
    assert ic == input_channels
    hh = w_in.shape[1]
    out_dim = w_out.shape[1]
    assert out_dim == input_channels * input_channels

    # Flatten all leading dims (batch x time steps ...) into one row axis so
    # many ODE evaluation points are fused into a single kernel launch.
    z2d = z.reshape(-1, ic)
    batch = z2d.shape[0]

    # --- tiling / padding (all static under jit) --------------------------
    tb = _pick_batch_tile(batch)
    padded_batch = _round_up(batch, tb)
    out_pad = _round_up(out_dim, 128)          # lane-dense output stores
    grid = (padded_batch // tb,)

    # --- boundary casts / zero-padding ------------------------------------
    compute_dtype = jnp.bfloat16
    z_p = jnp.pad(z2d, ((0, padded_batch - batch), (0, 0))).astype(compute_dtype)
    w_in_c = w_in.astype(compute_dtype)
    w1_c = w1.astype(compute_dtype)
    w2_c = w2.astype(compute_dtype)
    w_out_c = jnp.pad(w_out, ((0, 0), (0, out_pad - out_dim))).astype(compute_dtype)
    b_in_f = b_in.astype(jnp.float32)
    b1_f = b1.astype(jnp.float32)
    b2_f = b2.astype(jnp.float32)
    b_out_f = jnp.pad(b_out, ((0, 0), (0, out_pad - out_dim))).astype(jnp.float32)

    out2d = pl.pallas_call(
        _mlp_tanh_kernel,
        out_shape=jax.ShapeDtypeStruct((padded_batch, out_pad), jnp.float32),
        grid_spec=pltpu.PrefetchScalarGridSpec(
            num_scalar_prefetch=0,
            grid=grid,
            in_specs=[
                pl.BlockSpec((tb, ic), lambda i: (i, 0)),        # z tile (pipelined)
                pl.BlockSpec((ic, hh), lambda i: (0, 0)),        # W_in   (resident)
                pl.BlockSpec((1, hh), lambda i: (0, 0)),         # b_in
                pl.BlockSpec((hh, hh), lambda i: (0, 0)),        # W_test
                pl.BlockSpec((1, hh), lambda i: (0, 0)),         # b_test
                pl.BlockSpec((hh, hh), lambda i: (0, 0)),        # W_test2
                pl.BlockSpec((1, hh), lambda i: (0, 0)),         # b_test2
                pl.BlockSpec((hh, out_pad), lambda i: (0, 0)),   # W_out (lane-padded)
                pl.BlockSpec((1, out_pad), lambda i: (0, 0)),    # b_out (lane-padded)
            ],
            out_specs=pl.BlockSpec((tb, out_pad), lambda i: (i, 0)),
        ),
        compiler_params=pltpu.CompilerParams(
            dimension_semantics=("parallel",)),
    )(z_p, w_in_c, b_in_f, w1_c, b1_f, w2_c, b2_f, w_out_c, b_out_f)

    out = out2d[:batch, :out_dim]
    return out.reshape(*lead_shape, input_channels, input_channels)


def init_params(key, input_channels, hidden_atten_channels,
                hidden_hidden_atten_channels, num_hidden_layers):
    """PyTorch-Linear-like U(-1/sqrt(fan_in), 1/sqrt(fan_in)) init.

    hidden_atten_channels / num_hidden_layers are kept for signature parity
    with the PyTorch module; its forward pass does not use them.
    """
    del hidden_atten_channels, num_hidden_layers

    def linear(k, fan_in, fan_out):
        kw, kb = jax.random.split(k)
        bound = 1.0 / jnp.sqrt(jnp.float32(fan_in))
        w = jax.random.uniform(kw, (fan_in, fan_out), jnp.float32, -bound, bound)
        b = jax.random.uniform(kb, (1, fan_out), jnp.float32, -bound, bound)
        return w, b

    k0, k1, k2, k3 = jax.random.split(key, 4)
    hh = hidden_hidden_atten_channels
    w_in, b_in = linear(k0, input_channels, hh)
    w1, b1 = linear(k1, hh, hh)
    w2, b2 = linear(k2, hh, hh)
    w_out, b_out = linear(k3, hh, input_channels * input_channels)
    return (w_in, b_in, w1, b1, w2, b2, w_out, b_out)


def reference_forward(z, params, input_channels, compute_dtype=jnp.bfloat16):
    """Pure-JAX reference using the same bf16-operand / f32-accumulate math."""
    w_in, b_in, w1, b1, w2, b2, w_out, b_out = params
    cd = compute_dtype
    h = jnp.dot(z.astype(cd), w_in.astype(cd),
                preferred_element_type=jnp.float32) + b_in[0]
    h = jnp.maximum(h, 0.0)
    h = jnp.dot(h.astype(cd), w1.astype(cd),
                preferred_element_type=jnp.float32) + b1[0]
    h = jnp.maximum(h, 0.0)
    h = jnp.dot(h.astype(cd), w2.astype(cd),
                preferred_element_type=jnp.float32) + b2[0]
    h = jnp.maximum(h, 0.0)
    out = jnp.dot(h.astype(cd), w_out.astype(cd),
                  preferred_element_type=jnp.float32) + b_out[0]
    out = out.reshape(*z.shape[:-1], input_channels, input_channels)
    return jnp.tanh(out)


if __name__ == "__main__":
    input_channels = 4
    hidden_atten_channels = 32           # stored by the module, unused in forward
    hidden_hidden_atten_channels = 32
    num_hidden_layers = 2                # stored by the module, unused in forward

    batch, seq = 4, 16                   # 64 evaluation points fused per call

    key = jax.random.PRNGKey(0)
    kp, kz = jax.random.split(key)
    params = init_params(kp, input_channels, hidden_atten_channels,
                         hidden_hidden_atten_channels, num_hidden_layers)
    z = jax.random.normal(kz, (batch, seq, input_channels), jnp.float32)

    out = final_tanh_ff_forward(z, params, input_channels=input_channels)
    out = jax.block_until_ready(out)

    ref = reference_forward(z, params, input_channels)
    assert out.shape == (batch, seq, input_channels, input_channels), out.shape
    assert jnp.allclose(out, ref, atol=2e-3, rtol=2e-3), \
        float(jnp.max(jnp.abs(out - ref)))

    print("KERNEL_OK")
</pallas_src>

<mosaic_0001>
module attributes {stable_mosaic.version = 11 : i64} {
  func.func @_mlp_tanh_kernel(%arg0: i32, %arg1: memref<32x4xbf16, #tpu.memory_space<vmem>>, %arg2: memref<4x32xbf16, #tpu.memory_space<vmem>>, %arg3: memref<1x32xf32, #tpu.memory_space<vmem>>, %arg4: memref<32x32xbf16, #tpu.memory_space<vmem>>, %arg5: memref<1x32xf32, #tpu.memory_space<vmem>>, %arg6: memref<32x32xbf16, #tpu.memory_space<vmem>>, %arg7: memref<1x32xf32, #tpu.memory_space<vmem>>, %arg8: memref<32x128xbf16, #tpu.memory_space<vmem>>, %arg9: memref<1x128xf32, #tpu.memory_space<vmem>>, %arg10: memref<32x128xf32, #tpu.memory_space<vmem>>) attributes {dimension_semantics = [#tpu.dimension_semantics<parallel>], iteration_bounds = array<i64: 2>, scalar_prefetch = 0 : i64, scratch_operands = 0 : i64, tpu.core_type = #tpu.core_type<tc>, window_params = [{transform_indices = @transform_0, window_bounds = array<i64: 32, 4>}, {pipeline_mode = #tpu.pipeline_mode<synchronous>, transform_indices = @transform_1, window_bounds = array<i64: 4, 32>}, {pipeline_mode = #tpu.pipeline_mode<synchronous>, transform_indices = @transform_2, window_bounds = array<i64: 1, 32>}, {pipeline_mode = #tpu.pipeline_mode<synchronous>, transform_indices = @transform_3, window_bounds = array<i64: 32, 32>}, {pipeline_mode = #tpu.pipeline_mode<synchronous>, transform_indices = @transform_4, window_bounds = array<i64: 1, 32>}, {pipeline_mode = #tpu.pipeline_mode<synchronous>, transform_indices = @transform_5, window_bounds = array<i64: 32, 32>}, {pipeline_mode = #tpu.pipeline_mode<synchronous>, transform_indices = @transform_6, window_bounds = array<i64: 1, 32>}, {pipeline_mode = #tpu.pipeline_mode<synchronous>, transform_indices = @transform_7, window_bounds = array<i64: 32, 128>}, {pipeline_mode = #tpu.pipeline_mode<synchronous>, transform_indices = @transform_8, window_bounds = array<i64: 1, 128>}, {transform_indices = @transform_9, window_bounds = array<i64: 32, 128>}]} {
    %c0 = arith.constant 0 : index
    %c0_0 = arith.constant 0 : index
    %0 = vector.load %arg1[%c0, %c0_0] : memref<32x4xbf16, #tpu.memory_space<vmem>>, vector<32x4xbf16>
    %c0_1 = arith.constant 0 : index
    %c0_2 = arith.constant 0 : index
    %1 = vector.load %arg2[%c0_1, %c0_2] : memref<4x32xbf16, #tpu.memory_space<vmem>>, vector<4x32xbf16>
    %cst = arith.constant dense<0.000000e+00> : vector<32x32xf32>
    %2 = tpu.matmul %0, %1, %cst {dimension_numbers = #tpu.dot_dimension_numbers<[1], [0], [0], [1], [0, 0, 1, 1], [], []>} : vector<32x4xbf16>, vector<4x32xbf16>, vector<32x32xf32> -> vector<32x32xf32>
    %c0_3 = arith.constant 0 : index
    %c0_4 = arith.constant 0 : index
    %3 = vector.load %arg3[%c0_3, %c0_4] : memref<1x32xf32, #tpu.memory_space<vmem>>, vector<1x32xf32>
    %4 = vector.broadcast %3 : vector<1x32xf32> to vector<32x32xf32>
    %5 = arith.addf %2, %4 : vector<32x32xf32>
    %cst_5 = arith.constant 0.000000e+00 : f32
    %6 = vector.broadcast %cst_5 : f32 to vector<32x32xf32>
    %7 = arith.maximumf %5, %6 : vector<32x32xf32>
    %8 = arith.truncf %7 : vector<32x32xf32> to vector<32x32xbf16>
    %c0_6 = arith.constant 0 : index
    %c0_7 = arith.constant 0 : index
    %9 = vector.load %arg4[%c0_6, %c0_7] : memref<32x32xbf16, #tpu.memory_space<vmem>>, vector<32x32xbf16>
    %cst_8 = arith.constant dense<0.000000e+00> : vector<32x32xf32>
    %10 = tpu.matmul %8, %9, %cst_8 {dimension_numbers = #tpu.dot_dimension_numbers<[1], [0], [0], [1], [0, 0, 1, 1], [], []>} : vector<32x32xbf16>, vector<32x32xbf16>, vector<32x32xf32> -> vector<32x32xf32>
    %c0_9 = arith.constant 0 : index
    %c0_10 = arith.constant 0 : index
    %11 = vector.load %arg5[%c0_9, %c0_10] : memref<1x32xf32, #tpu.memory_space<vmem>>, vector<1x32xf32>
    %12 = vector.broadcast %11 : vector<1x32xf32> to vector<32x32xf32>
    %13 = arith.addf %10, %12 : vector<32x32xf32>
    %cst_11 = arith.constant 0.000000e+00 : f32
    %14 = vector.broadcast %cst_11 : f32 to vector<32x32xf32>
    %15 = arith.maximumf %13, %14 : vector<32x32xf32>
    %16 = arith.truncf %15 : vector<32x32xf32> to vector<32x32xbf16>
    %c0_12 = arith.constant 0 : index
    %c0_13 = arith.constant 0 : index
    %17 = vector.load %arg6[%c0_12, %c0_13] : memref<32x32xbf16, #tpu.memory_space<vmem>>, vector<32x32xbf16>
    %cst_14 = arith.constant dense<0.000000e+00> : vector<32x32xf32>
    %18 = tpu.matmul %16, %17, %cst_14 {dimension_numbers = #tpu.dot_dimension_numbers<[1], [0], [0], [1], [0, 0, 1, 1], [], []>} : vector<32x32xbf16>, vector<32x32xbf16>, vector<32x32xf32> -> vector<32x32xf32>
    %c0_15 = arith.constant 0 : index
    %c0_16 = arith.constant 0 : index
    %19 = vector.load %arg7[%c0_15, %c0_16] : memref<1x32xf32, #tpu.memory_space<vmem>>, vector<1x32xf32>
    %20 = vector.broadcast %19 : vector<1x32xf32> to vector<32x32xf32>
    %21 = arith.addf %18, %20 : vector<32x32xf32>
    %cst_17 = arith.constant 0.000000e+00 : f32
    %22 = vector.broadcast %cst_17 : f32 to vector<32x32xf32>
    %23 = arith.maximumf %21, %22 : vector<32x32xf32>
    %24 = arith.truncf %23 : vector<32x32xf32> to vector<32x32xbf16>
    %c0_18 = arith.constant 0 : index
    %c0_19 = arith.constant 0 : index
    %25 = vector.load %arg8[%c0_18, %c0_19] : memref<32x128xbf16, #tpu.memory_space<vmem>>, vector<32x128xbf16>
    %cst_20 = arith.constant dense<0.000000e+00> : vector<32x128xf32>
    %26 = tpu.matmul %24, %25, %cst_20 {dimension_numbers = #tpu.dot_dimension_numbers<[1], [0], [0], [1], [0, 0, 1, 1], [], []>} : vector<32x32xbf16>, vector<32x128xbf16>, vector<32x128xf32> -> vector<32x128xf32>
    %c0_21 = arith.constant 0 : index
    %c0_22 = arith.constant 0 : index
    %27 = vector.load %arg9[%c0_21, %c0_22] : memref<1x128xf32, #tpu.memory_space<vmem>>, vector<1x128xf32>
    %28 = vector.broadcast %27 : vector<1x128xf32> to vector<32x128xf32>
    %29 = arith.addf %26, %28 : vector<32x128xf32>
    %30 = math.tanh %29 : vector<32x128xf32>
    %c0_23 = arith.constant 0 : index
    %c0_24 = arith.constant 0 : index
    %31 = vector.load %arg10[%c0_23, %c0_24] : memref<32x128xf32, #tpu.memory_space<vmem>>, vector<32x128xf32>
    tpu.vector_store %arg10[%c0_23, %c0_24], %30 {strides = array<i32>} : memref<32x128xf32, #tpu.memory_space<vmem>>, vector<32x128xf32>,
    return
  }
  func.func @transform_0(%arg0: i32) -> (i32, i32) {
    %c0_i32 = arith.constant 0 : i32
    %c0_i32_0 = arith.constant 0 : i32
    return %arg0, %c0_i32 : i32, i32
  }
  func.func @transform_1(%arg0: i32) -> (i32, i32) {
    %c0_i32 = arith.constant 0 : i32
    %c0_i32_0 = arith.constant 0 : i32
    %c0_i32_1 = arith.constant 0 : i32
    return %c0_i32, %c0_i32_0 : i32, i32
  }
  func.func @transform_2(%arg0: i32) -> (i32, i32) {
    %c0_i32 = arith.constant 0 : i32
    %c0_i32_0 = arith.constant 0 : i32
    %c0_i32_1 = arith.constant 0 : i32
    return %c0_i32, %c0_i32_0 : i32, i32
  }
  func.func @transform_3(%arg0: i32) -> (i32, i32) {
    %c0_i32 = arith.constant 0 : i32
    %c0_i32_0 = arith.constant 0 : i32
    %c0_i32_1 = arith.constant 0 : i32
    return %c0_i32, %c0_i32_0 : i32, i32
  }
  func.func @transform_4(%arg0: i32) -> (i32, i32) {
    %c0_i32 = arith.constant 0 : i32
    %c0_i32_0 = arith.constant 0 : i32
    %c0_i32_1 = arith.constant 0 : i32
    return %c0_i32, %c0_i32_0 : i32, i32
  }
  func.func @transform_5(%arg0: i32) -> (i32, i32) {
    %c0_i32 = arith.constant 0 : i32
    %c0_i32_0 = arith.constant 0 : i32
    %c0_i32_1 = arith.constant 0 : i32
    return %c0_i32, %c0_i32_0 : i32, i32
  }
  func.func @transform_6(%arg0: i32) -> (i32, i32) {
    %c0_i32 = arith.constant 0 : i32
    %c0_i32_0 = arith.constant 0 : i32
    %c0_i32_1 = arith.constant 0 : i32
    return %c0_i32, %c0_i32_0 : i32, i32
  }
  func.func @transform_7(%arg0: i32) -> (i32, i32) {
    %c0_i32 = arith.constant 0 : i32
    %c0_i32_0 = arith.constant 0 : i32
    %c0_i32_1 = arith.constant 0 : i32
    return %c0_i32, %c0_i32_0 : i32, i32
  }
  func.func @transform_8(%arg0: i32) -> (i32, i32) {
    %c0_i32 = arith.constant 0 : i32
    %c0_i32_0 = arith.constant 0 : i32
    %c0_i32_1 = arith.constant 0 : i32
    return %c0_i32, %c0_i32_0 : i32, i32
  }
  func.func @transform_9(%arg0: i32) -> (i32, i32) {
    %c0_i32 = arith.constant 0 : i32
    %c0_i32_0 = arith.constant 0 : i32
    return %arg0, %c0_i32 : i32, i32
  }
}

</mosaic_0001>

<bundles_post_ra>
// kernel: final_tanh_ff_forward.1
= control target key start
LH: loop header
LB: loop body
LE: loop exit
PB: predicated region body
PF: predicated region fallthrough
CT: control target
= control target key end

     0   :  { %s741_s30 = smov 0   ;;  %s801_s0 = inlined_call_operand.vmem [shape: bf16[64,4], index: 0, kind: input, shape index: {}]   ;;  %s802_s1 = inlined_call_operand.vmem [shape: bf16[4,32], index: 1, kind: input, shape index: {}]   ;;  %s803_s2 = inlined_call_operand.vmem [shape: f32[1,32], index: 2, kind: input, shape index: {}]   ;;  %s804_s3 = inlined_call_operand.vmem [shape: bf16[32,32], index: 3, kind: input, shape index: {}]   ;;  %s805_s4 = inlined_call_operand.vmem [shape: f32[1,32], index: 4, kind: input, shape index: {}]   ;;  %s806_s5 = inlined_call_operand.vmem [shape: bf16[32,32], index: 5, kind: input, shape index: {}]   ;;  %s807_s6 = inlined_call_operand.vmem [shape: f32[1,32], index: 6, kind: input, shape index: {}]   ;;  %s808_s7 = inlined_call_operand.vmem [shape: bf16[32,128], index: 7, kind: input, shape index: {}]   ;;  %s809_s8 = inlined_call_operand.vmem [shape: f32[1,128], index: 8, kind: input, shape index: {}]   ;;  %s810_s9 = inlined_call_operand.vmem [shape: f32[64,128], index: 9, kind: output, shape index: {}]  }
   0x1 LB: > { %s604_s10 = sadd.s32 4294967295, %s689_s30   ;;  %p608_p0 = scmp.ge.s32.totalorder %s689_s30, 1  ;;  %s689_s30 = sphi %s741_s30, %s19_s30  }
   0x2   : > { %p288_p1 = scmp.lt.s32.totalorder %s689_s30, 3 }
   0x4   : > { %p289_p2 = pnand %p608_p0, %p288_p1 }
   0x5   : > { %s609_s13 = sshll.u32 (!%p289_p2), %s604_s10, 2 }
   0x6   : > { %292 = sbr.rel (%p289_p2) target bundleno = 608 (0x260), region = 56  ;;  %p325_p3 = scmp.lt.s32.totalorder (!%p289_p2), %s609_s13, 7 }
   0xb   : > { %v341_v0 = vld [vmem:[%s802_s1] sm:$0x3]  ;;  %vm363_vm0 = vcmask 1041408   ;;  %s812_s13 = smov (!%p325_p3, %s609_s13), 7  ;;  %vm356_vm1 = vcmask 31744   ;;  %v658_v4 = vld [vmem:[%s804_s3 + $0x8] sm:$0xff] }
   0xc   : > { %v365_v1 = vsel %vm363_vm0, %v341_v0, 0  ;;  %s610_s14 = sshll.u32 %s812_s13, 2  ;;  %425 = vmatpush.bf16.msra.mxu1 %v658_v4  ;;  %v657_v5 = vld [vmem:[%s804_s3] sm:$0xff]  ;;  %vm412_vm2 = vcmask 261120   ;;  %v660_v21 = vld [vmem:[%s806_s5 + $0x8] sm:$0xff]  ;;  %s612_s19 = sshll.u32 %s812_s13, 3 }
   0xd   : > { %374 = vmatpush.bf16.msra.mxu0 %v365_v1  ;;  %s328_s17 = scalar_lea.vmem %s801_s0, %s610_s14  ;;  %v671_v7 = vld [vmem:[%s803_s2] ss:$0 sm:$0xff]  ;;  %476 = vmatpush.bf16.msra.mxu2 %v660_v21  ;;  %v662_v38 = vld [vmem:[%s808_s7 + $0x8] sm:$0xff]  ;;  %s334_s22 = scalar_lea.vmem %s810_s9, %s612_s19 }
   0xe   : > { %v655_v2 = vld [vmem:[%s328_s17] sm:$0xff]  ;;  %v656_v3 = vld [vmem:[%s328_s17 + $0x8] sm:$0xff]  ;;  %527 = vmatpush.bf16.msra.mxu3 %v662_v38 }
   0xf   : > { %v659_v22 = vld [vmem:[%s806_s5] sm:$0xff] }
  0x10   : > { %621 = vmatmul.msk.bf16.vlgmr.msra.gmra.mxu0 %vm356_vm1, %v655_v2  ;;  %426 = vmatpush.bf16.msra.mxu1 %v657_v5  ;;  %v672_v24 = vld [vmem:[%s805_s4] ss:$0 sm:$0xff] }
  0x11   : > { %477 = vmatpush.bf16.msra.mxu2 %v659_v22  ;;  %v661_v39 = vld [vmem:[%s808_s7] sm:$0xff] }
  0x12   : > { %528 = vmatpush.bf16.msra.mxu3 %v661_v39  ;;  %v673_v41 = vld [vmem:[%s807_s6] ss:$0 sm:$0xff] }
  0x13   : > { %v674_v55 = vld [vmem:[%s809_s8] ss:$0 sm:$0xff] }
  0x20   : > { %622 = vmatmul.msk.bf16.gmra.mxu0 %vm356_vm1, %v656_v3 }
  0x8d   : > { %v376_v6 = vpop.f32.mrf.mxu0 }
  0x8e   : > { %v377_v8 = vadd.f32 %v671_v7, %v376_v6 }
  0x90   : > { %v386_v11 = vmax.f32 %v377_v8, 0.0 }
  0x95   : > { %v378_v9 = vpop.f32.mrf.mxu0 }
  0x96   : > { %v379_v10 = vadd.f32 %v671_v7, %v378_v9 }
  0x98   : > { %v387_v12 = vmax.f32 %v379_v10, 0.0 }
  0x9a   : > { %v390_v13 = vpack.c.bf16 %v387_v12, %v386_v11 }
  0x9c   : > { %631 = vmatmul.msk.bf16.vlgmr.msra.gmra.mxu1 %vm412_vm2, %v390_v13 }
  0x9d   : > { %v381_v14 = vpop.f32.mrf.mxu0 }
  0x9e   : > { %v382_v15 = vadd.f32 %v671_v7, %v381_v14 }
  0xa0   : > { %v388_v18 = vmax.f32 %v382_v15, 0.0 }
  0xa5   : > { %v383_v16 = vpop.f32.mrf.mxu0 }
  0xa6   : > { %v384_v17 = vadd.f32 %v671_v7, %v383_v16 }
  0xa8   : > { %v389_v19 = vmax.f32 %v384_v17, 0.0 }
  0xaa   : > { %v391_v20 = vpack.c.bf16 %v389_v19, %v388_v18 }
  0xac   : > { %632 = vmatmul.msk.bf16.gmra.mxu1 %vm412_vm2, %v391_v20 }
 0x119   : > { %v428_v23 = vpop.f32.mrf.mxu1 }
 0x11a   : > { %v429_v25 = vadd.f32 %v672_v24, %v428_v23 }
 0x11c   : > { %v438_v28 = vmax.f32 %v429_v25, 0.0 }
 0x121   : > { %v430_v26 = vpop.f32.mrf.mxu1 }
 0x122   : > { %v431_v27 = vadd.f32 %v672_v24, %v430_v26 }
 0x124   : > { %v439_v29 = vmax.f32 %v431_v27, 0.0 }
 0x126   : > { %v442_v30 = vpack.c.bf16 %v439_v29, %v438_v28 }
 0x128   : > { %641 = vmatmul.msk.bf16.vlgmr.msra.gmra.mxu2 %vm412_vm2, %v442_v30 }
 0x129   : > { %v433_v31 = vpop.f32.mrf.mxu1 }
 0x12a   : > { %v434_v32 = vadd.f32 %v672_v24, %v433_v31 }
 0x12c   : > { %v440_v35 = vmax.f32 %v434_v32, 0.0 }
 0x131   : > { %v435_v33 = vpop.f32.mrf.mxu1 }
 0x132   : > { %v436_v34 = vadd.f32 %v672_v24, %v435_v33 }
 0x134   : > { %v441_v36 = vmax.f32 %v436_v34, 0.0 }
 0x136   : > { %v443_v37 = vpack.c.bf16 %v441_v36, %v440_v35 }
 0x138   : > { %642 = vmatmul.msk.bf16.gmra.mxu2 %vm412_vm2, %v443_v37 }
 0x1ab   : > { %v479_v40 = vpop.f32.mrf.mxu2 }
 0x1ac   : > { %v480_v42 = vadd.f32 %v673_v41, %v479_v40 }
 0x1ae   : > { %v489_v45 = vmax.f32 %v480_v42, 0.0 }
 0x1b3   : > { %v481_v43 = vpop.f32.mrf.mxu2 }
 0x1b4   : > { %v482_v44 = vadd.f32 %v673_v41, %v481_v43 }
 0x1b6   : > { %v490_v46 = vmax.f32 %v482_v44, 0.0 }
 0x1b8   : > { %v493_v47 = vpack.c.bf16 %v490_v46, %v489_v45 }
 0x1ba   : > { %651 = vmatmul.msk.bf16.vlgmr.msra.gmra.mxu3 %vm412_vm2, %v493_v47 }
 0x1bb   : > { %v484_v48 = vpop.f32.mrf.mxu2 }
 0x1bc   : > { %v485_v49 = vadd.f32 %v673_v41, %v484_v48 }
 0x1be   : > { %v491_v52 = vmax.f32 %v485_v49, 0.0 }
 0x1c3   : > { %v486_v50 = vpop.f32.mrf.mxu2 }
 0x1c4   : > { %v487_v51 = vadd.f32 %v673_v41, %v486_v50 }
 0x1c6   : > { %v492_v53 = vmax.f32 %v487_v51, 0.0 }
 0x1c8   : > { %v494_v54 = vpack.c.bf16 %v492_v53, %v491_v52 }
 0x1ca   : > { %652 = vmatmul.msk.bf16.gmra.mxu3 %vm412_vm2, %v494_v54 }
 0x23d   : > { %v530_v56 = vpop.f32.mrf.mxu3 }
 0x23e   : > { %v531_v57 = vadd.f32 %v674_v55, %v530_v56 }
 0x240   : > { %675 = vtanh.f32 %v531_v57 }
 0x245   : > { %v532_v58 = vpop.f32.mrf.mxu3 }
 0x246   : > { %v676_v59 = vpop.eup %675  ;;  %v533_v60 = vadd.f32 %v674_v55, %v532_v58 }
 0x247   : > { %544 = vst [vmem:[%s334_s22] sm:$0xff] %v676_v59 }
 0x248   : > { %677 = vtanh.f32 %v533_v60 }
 0x24d   : > { %v535_v61 = vpop.f32.mrf.mxu3 }
 0x24e   : > { %v678_v62 = vpop.eup %677  ;;  %v536_v63 = vadd.f32 %v674_v55, %v535_v61 }
 0x24f   : > { %545 = vst [vmem:[%s334_s22 + $0x8] sm:$0xff] %v678_v62 }
 0x250   : > { %679 = vtanh.f32 %v536_v63 }
 0x255   : > { %v537_v0 = vpop.f32.mrf.mxu3 }
 0x256   : > { %v680_v1 = vpop.eup %679  ;;  %v538_v2 = vadd.f32 %v674_v55, %v537_v0 }
 0x257   : > { %546 = vst [vmem:[%s334_s22 + $0x10] sm:$0xff] %v680_v1 }
 0x258   : > { %681 = vtanh.f32 %v538_v2 }
 0x25e   : > { %v682_v3 = vpop.eup %681 }
 0x25f   : > { %547 = vst [vmem:[%s334_s22 + $0x18] sm:$0xff] %v682_v3 }
 0x260 PF: > { %s19_s30 = sadd.s32 1, %s689_s30  }
 0x261   : > { %p16_p4 = scmp.ge.s32.totalorder %s19_s30, 4  }
 0x263   :  { %18 = sbr.rel (!%p16_p4) target bundleno = 1 (0x1), region = 86 }

</bundles_post_ra>
